<compile_context>
chip_gen: v7x
topology: tpu7x:2x2x1
jax: 0.10.0
libtpu: 0.0.40
codegen_flags: <defaults>
</compile_context>

<pallas_src>
import functools

import jax
import jax.numpy as jnp
from jax.experimental import pallas as pl
from jax.experimental.pallas import tpu as pltpu


def _round_up(v, m):
    return ((v + m - 1) // m) * m


def actor_critic_kernel(x_ref, w1_ref, b1_ref, w2_ref, b2_ref,
                        wh_ref, bh_ref, out_ref, *, action_size):
    # common = Linear -> Tanh -> Linear -> Tanh (bf16 MXU operands, f32 accumulate;
    # padded hidden lanes stay exactly 0 since tanh(0 + 0) = 0).
    x = x_ref[...].astype(jnp.bfloat16)
    h1 = jnp.tanh(jnp.dot(x, w1_ref[...], preferred_element_type=jnp.float32)
                  + b1_ref[...])
    h2 = jnp.tanh(jnp.dot(h1.astype(jnp.bfloat16), w2_ref[...],
                          preferred_element_type=jnp.float32) + b2_ref[...])

    # fused heads: one MXU pass; lanes [0:A) = actor logits, lane A = critic value
    head = jnp.dot(h2.astype(jnp.bfloat16), wh_ref[...],
                   preferred_element_type=jnp.float32) + bh_ref[...]

    lane = jax.lax.broadcasted_iota(jnp.int32, head.shape, 1)
    is_actor = lane < action_size
    is_value = lane == action_size

    # numerically-stable softmax restricted to the real action lanes; exact f32
    # division so probs sum to 1 (approx reciprocal broke the normalization check)
    logits = jnp.where(is_actor, head, -jnp.inf)
    m = jnp.max(logits, axis=-1, keepdims=True)
    e = jnp.exp(logits - m)                      # exp(-inf) = 0 on pad lanes
    probs = e / jnp.sum(e, axis=-1, keepdims=True)

    # single narrow store: probs in [0:A), value in lane A, 0 on pad lanes
    out_ref[...] = jnp.where(is_value, head, probs)


def init_params(key, state_size, action_size, hidsize2):
    """Deterministic PyTorch-style (uniform +-1/sqrt(fan_in)) init, [in, out] layout."""
    def linear(k, fan_in, fan_out):
        kw, kb = jax.random.split(k)
        bound = 1.0 / jnp.sqrt(jnp.float32(fan_in))
        w = jax.random.uniform(kw, (fan_in, fan_out), jnp.float32, -bound, bound)
        b = jax.random.uniform(kb, (1, fan_out), jnp.float32, -bound, bound)
        return w, b

    k1, k2, k3, k4 = jax.random.split(key, 4)
    w1, b1 = linear(k1, state_size, hidsize2)   # common.0
    w2, b2 = linear(k2, hidsize2, hidsize2)     # common.2
    wa, ba = linear(k3, hidsize2, action_size)  # actor.0
    wc, bc = linear(k4, hidsize2, 1)            # critic.0
    return w1, b1, w2, b2, wa, ba, wc, bc


def pack_params(params):
    """Pad/fuse per-layer params into the kernel layout. Weights -> bf16, biases f32."""
    w1, b1, w2, b2, wa, ba, wc, bc = params
    S, H = w1.shape
    A = wa.shape[1]
    hid_pad = _round_up(H, 128)                 # lane-dense hidden width
    out_pad = _round_up(A + 1, 8)               # narrow fused-head width (actor + value)

    w1p = jnp.zeros((S, hid_pad), jnp.float32).at[:, :H].set(w1).astype(jnp.bfloat16)
    b1p = jnp.zeros((1, hid_pad), jnp.float32).at[:, :H].set(b1)
    w2p = jnp.zeros((hid_pad, hid_pad), jnp.float32).at[:H, :H].set(w2).astype(jnp.bfloat16)
    b2p = jnp.zeros((1, hid_pad), jnp.float32).at[:, :H].set(b2)
    wh = (jnp.zeros((hid_pad, out_pad), jnp.float32)
          .at[:H, :A].set(wa).at[:H, A:A + 1].set(wc)).astype(jnp.bfloat16)
    bh = (jnp.zeros((1, out_pad), jnp.float32)
          .at[:, :A].set(ba).at[:, A:A + 1].set(bc))
    return w1p, b1p, w2p, b2p, wh, bh


@functools.partial(jax.jit, static_argnames=("action_size",))
def actor_critic_forward(x, packed, action_size):
    """Returns (action_probs [B, A], state_value [B, 1])."""
    w1, b1, w2, b2, wh, bh = packed
    B, S = x.shape
    hid_pad = w1.shape[1]
    out_pad = wh.shape[1]
    assert action_size + 1 <= out_pad

    # Batch tile: large tiles amortize the ~0.35us/step overhead; once B >= 64,
    # split the batch into >= 2 grid steps so both v7x TensorCores get work
    # (no-op on single-TC v5e/v6e). Weights stay VMEM-resident across steps.
    TARGET_BM = 1024
    if B < 64:
        bm = max(8, _round_up(B, 8))            # tiny batch: launch-overhead bound
    else:
        bm = min(TARGET_BM, _round_up(pl.cdiv(B, 2), 8))
    b_pad = _round_up(B, bm)
    if b_pad != B:
        x = jnp.pad(x, ((0, b_pad - B), (0, 0)))

    kernel = functools.partial(actor_critic_kernel, action_size=action_size)
    weight_spec = lambda a: pl.BlockSpec(a.shape, lambda i: (0, 0))

    cost = pl.CostEstimate(
        flops=2 * b_pad * (S * hid_pad + hid_pad * hid_pad + hid_pad * out_pad),
        transcendentals=b_pad * (2 * hid_pad + out_pad),
        bytes_accessed=(4 * b_pad * S + 4 * b_pad * out_pad
                        + 2 * (S * hid_pad + hid_pad * hid_pad + hid_pad * out_pad)
                        + 4 * (2 * hid_pad + out_pad)),
    )

    out = pl.pallas_call(
        kernel,
        out_shape=jax.ShapeDtypeStruct((b_pad, out_pad), jnp.float32),
        grid=(b_pad // bm,),
        in_specs=[
            pl.BlockSpec((bm, S), lambda i: (i, 0)),
            weight_spec(w1), weight_spec(b1),
            weight_spec(w2), weight_spec(b2),
            weight_spec(wh), weight_spec(bh),
        ],
        out_specs=pl.BlockSpec((bm, out_pad), lambda i: (i, 0)),
        compiler_params=pltpu.CompilerParams(
            dimension_semantics=("parallel",)),
        cost_estimate=cost,
    )(x, w1, b1, w2, b2, wh, bh)

    probs = out[:B, :action_size]
    value = out[:B, action_size:action_size + 1]
    return probs, value


def reference_forward(x, params):
    w1, b1, w2, b2, wa, ba, wc, bc = params
    h = jnp.tanh(x @ w1 + b1)
    h = jnp.tanh(h @ w2 + b2)
    probs = jax.nn.softmax(h @ wa + ba, axis=-1)
    value = h @ wc + bc
    return probs, value


if __name__ == "__main__":
    # Small shapes consistent with the module (Flatland uses 5 actions).
    batch = 8
    state_size = 32
    hidsize2 = 64
    action_size = 5

    key = jax.random.PRNGKey(0)
    k_params, k_x = jax.random.split(key)
    params = init_params(k_params, state_size, action_size, hidsize2)
    packed = pack_params(params)
    x = jax.random.normal(k_x, (batch, state_size), jnp.float32)

    probs, value = actor_critic_forward(x, packed, action_size)
    probs = jax.block_until_ready(probs)
    value = jax.block_until_ready(value)

    # Sanity-check against a plain-JAX f32 reference (bf16 MXU operands -> looser tol).
    probs_ref, value_ref = reference_forward(x, params)
    assert probs.shape == (batch, action_size) and value.shape == (batch, 1)
    assert jnp.allclose(probs, probs_ref, atol=3e-2), "actor probs mismatch"
    assert jnp.allclose(value, value_ref, atol=5e-2, rtol=5e-2), "critic value mismatch"
    assert jnp.allclose(jnp.sum(probs, axis=-1), 1.0, atol=1e-3), "softmax not normalized"

    print("KERNEL_OK")
</pallas_src>

<mosaic_0001>
module attributes {stable_mosaic.version = 11 : i64} {
  func.func @actor_critic_kernel(%arg0: i32, %arg1: memref<8x32xf32, #tpu.memory_space<vmem>>, %arg2: memref<32x128xbf16, #tpu.memory_space<vmem>>, %arg3: memref<1x128xf32, #tpu.memory_space<vmem>>, %arg4: memref<128x128xbf16, #tpu.memory_space<vmem>>, %arg5: memref<1x128xf32, #tpu.memory_space<vmem>>, %arg6: memref<128x8xbf16, #tpu.memory_space<vmem>>, %arg7: memref<1x8xf32, #tpu.memory_space<vmem>>, %arg8: memref<8x8xf32, #tpu.memory_space<vmem>>) attributes {dimension_semantics = [#tpu.dimension_semantics<parallel>], iteration_bounds = array<i64: 1>, scalar_prefetch = 0 : i64, scratch_operands = 0 : i64, tpu.core_type = #tpu.core_type<tc>, window_params = [{transform_indices = @transform_0, window_bounds = array<i64: 8, 32>}, {pipeline_mode = #tpu.pipeline_mode<synchronous>, transform_indices = @transform_1, window_bounds = array<i64: 32, 128>}, {pipeline_mode = #tpu.pipeline_mode<synchronous>, transform_indices = @transform_2, window_bounds = array<i64: 1, 128>}, {pipeline_mode = #tpu.pipeline_mode<synchronous>, transform_indices = @transform_3, window_bounds = array<i64: 128, 128>}, {pipeline_mode = #tpu.pipeline_mode<synchronous>, transform_indices = @transform_4, window_bounds = array<i64: 1, 128>}, {pipeline_mode = #tpu.pipeline_mode<synchronous>, transform_indices = @transform_5, window_bounds = array<i64: 128, 8>}, {pipeline_mode = #tpu.pipeline_mode<synchronous>, transform_indices = @transform_6, window_bounds = array<i64: 1, 8>}, {transform_indices = @transform_7, window_bounds = array<i64: 8, 8>}]} {
    %c0 = arith.constant 0 : index
    %c0_0 = arith.constant 0 : index
    %0 = vector.load %arg1[%c0, %c0_0] : memref<8x32xf32, #tpu.memory_space<vmem>>, vector<8x32xf32>
    %1 = arith.truncf %0 : vector<8x32xf32> to vector<8x32xbf16>
    %c0_1 = arith.constant 0 : index
    %c0_2 = arith.constant 0 : index
    %2 = vector.load %arg2[%c0_1, %c0_2] : memref<32x128xbf16, #tpu.memory_space<vmem>>, vector<32x128xbf16>
    %cst = arith.constant dense<0.000000e+00> : vector<8x128xf32>
    %3 = tpu.matmul %1, %2, %cst {dimension_numbers = #tpu.dot_dimension_numbers<[1], [0], [0], [1], [0, 0, 1, 1], [], []>} : vector<8x32xbf16>, vector<32x128xbf16>, vector<8x128xf32> -> vector<8x128xf32>
    %c0_3 = arith.constant 0 : index
    %c0_4 = arith.constant 0 : index
    %4 = vector.load %arg3[%c0_3, %c0_4] : memref<1x128xf32, #tpu.memory_space<vmem>>, vector<1x128xf32>
    %5 = vector.broadcast %4 : vector<1x128xf32> to vector<8x128xf32>
    %6 = arith.addf %3, %5 : vector<8x128xf32>
    %7 = math.tanh %6 : vector<8x128xf32>
    %8 = arith.truncf %7 : vector<8x128xf32> to vector<8x128xbf16>
    %c0_5 = arith.constant 0 : index
    %c0_6 = arith.constant 0 : index
    %9 = vector.load %arg4[%c0_5, %c0_6] : memref<128x128xbf16, #tpu.memory_space<vmem>>, vector<128x128xbf16>
    %cst_7 = arith.constant dense<0.000000e+00> : vector<8x128xf32>
    %10 = tpu.matmul %8, %9, %cst_7 {dimension_numbers = #tpu.dot_dimension_numbers<[1], [0], [0], [1], [0, 0, 1, 1], [], []>} : vector<8x128xbf16>, vector<128x128xbf16>, vector<8x128xf32> -> vector<8x128xf32>
    %c0_8 = arith.constant 0 : index
    %c0_9 = arith.constant 0 : index
    %11 = vector.load %arg5[%c0_8, %c0_9] : memref<1x128xf32, #tpu.memory_space<vmem>>, vector<1x128xf32>
    %12 = vector.broadcast %11 : vector<1x128xf32> to vector<8x128xf32>
    %13 = arith.addf %10, %12 : vector<8x128xf32>
    %14 = math.tanh %13 : vector<8x128xf32>
    %15 = arith.truncf %14 : vector<8x128xf32> to vector<8x128xbf16>
    %c0_10 = arith.constant 0 : index
    %c0_11 = arith.constant 0 : index
    %16 = vector.load %arg6[%c0_10, %c0_11] : memref<128x8xbf16, #tpu.memory_space<vmem>>, vector<128x8xbf16>
    %cst_12 = arith.constant dense<0.000000e+00> : vector<8x8xf32>
    %17 = tpu.matmul %15, %16, %cst_12 {dimension_numbers = #tpu.dot_dimension_numbers<[1], [0], [0], [1], [0, 0, 1, 1], [], []>} : vector<8x128xbf16>, vector<128x8xbf16>, vector<8x8xf32> -> vector<8x8xf32>
    %c0_13 = arith.constant 0 : index
    %c0_14 = arith.constant 0 : index
    %18 = vector.load %arg7[%c0_13, %c0_14] : memref<1x8xf32, #tpu.memory_space<vmem>>, vector<1x8xf32>
    %19 = vector.broadcast %18 : vector<1x8xf32> to vector<8x8xf32>
    %20 = arith.addf %17, %19 : vector<8x8xf32>
    %21 = tpu.iota {dimensions = array<i32: 1>} : vector<8x8xi32>
    %c5_i32 = arith.constant 5 : i32
    %22 = vector.broadcast %c5_i32 : i32 to vector<8x8xi32>
    %23 = arith.cmpi slt, %21, %22 : vector<8x8xi32>
    %c5_i32_15 = arith.constant 5 : i32
    %24 = vector.broadcast %c5_i32_15 : i32 to vector<8x8xi32>
    %25 = arith.cmpi eq, %21, %24 : vector<8x8xi32>
    %cst_16 = arith.constant 0xFF800000 : f32
    %26 = vector.broadcast %cst_16 : f32 to vector<8x8xf32>
    %27 = arith.select %23, %20, %26 : vector<8x8xi1>, vector<8x8xf32>
    %cst_17 = arith.constant dense<0xFF800000> : vector<8xf32>
    %28 = vector.multi_reduction <maximumf>, %27, %cst_17 [1] : vector<8x8xf32> to vector<8xf32>
    %29 = vector.shape_cast %28 : vector<8xf32> to vector<8x1xf32>
    %30 = vector.broadcast %29 : vector<8x1xf32> to vector<8x8xf32>
    %31 = arith.subf %27, %30 : vector<8x8xf32>
    %32 = math.exp %31 : vector<8x8xf32>
    %cst_18 = arith.constant dense<0.000000e+00> : vector<8xf32>
    %33 = vector.multi_reduction <add>, %32, %cst_18 [1] : vector<8x8xf32> to vector<8xf32>
    %34 = vector.shape_cast %33 : vector<8xf32> to vector<8x1xf32>
    %35 = vector.broadcast %34 : vector<8x1xf32> to vector<8x8xf32>
    %36 = arith.divf %32, %35 : vector<8x8xf32>
    %37 = arith.select %25, %20, %36 : vector<8x8xi1>, vector<8x8xf32>
    %c0_19 = arith.constant 0 : index
    %c0_20 = arith.constant 0 : index
    %38 = vector.load %arg8[%c0_19, %c0_20] : memref<8x8xf32, #tpu.memory_space<vmem>>, vector<8x8xf32>
    tpu.vector_store %arg8[%c0_19, %c0_20], %37 {strides = array<i32>} : memref<8x8xf32, #tpu.memory_space<vmem>>, vector<8x8xf32>,
    return
  }
  func.func @transform_0(%arg0: i32) -> (i32, i32) {
    %c0_i32 = arith.constant 0 : i32
    %c0_i32_0 = arith.constant 0 : i32
    return %arg0, %c0_i32 : i32, i32
  }
  func.func @transform_1(%arg0: i32) -> (i32, i32) {
    %c0_i32 = arith.constant 0 : i32
    %c0_i32_0 = arith.constant 0 : i32
    %c0_i32_1 = arith.constant 0 : i32
    return %c0_i32, %c0_i32_0 : i32, i32
  }
  func.func @transform_2(%arg0: i32) -> (i32, i32) {
    %c0_i32 = arith.constant 0 : i32
    %c0_i32_0 = arith.constant 0 : i32
    %c0_i32_1 = arith.constant 0 : i32
    return %c0_i32, %c0_i32_0 : i32, i32
  }
  func.func @transform_3(%arg0: i32) -> (i32, i32) {
    %c0_i32 = arith.constant 0 : i32
    %c0_i32_0 = arith.constant 0 : i32
    %c0_i32_1 = arith.constant 0 : i32
    return %c0_i32, %c0_i32_0 : i32, i32
  }
  func.func @transform_4(%arg0: i32) -> (i32, i32) {
    %c0_i32 = arith.constant 0 : i32
    %c0_i32_0 = arith.constant 0 : i32
    %c0_i32_1 = arith.constant 0 : i32
    return %c0_i32, %c0_i32_0 : i32, i32
  }
  func.func @transform_5(%arg0: i32) -> (i32, i32) {
    %c0_i32 = arith.constant 0 : i32
    %c0_i32_0 = arith.constant 0 : i32
    %c0_i32_1 = arith.constant 0 : i32
    return %c0_i32, %c0_i32_0 : i32, i32
  }
  func.func @transform_6(%arg0: i32) -> (i32, i32) {
    %c0_i32 = arith.constant 0 : i32
    %c0_i32_0 = arith.constant 0 : i32
    %c0_i32_1 = arith.constant 0 : i32
    return %c0_i32, %c0_i32_0 : i32, i32
  }
  func.func @transform_7(%arg0: i32) -> (i32, i32) {
    %c0_i32 = arith.constant 0 : i32
    %c0_i32_0 = arith.constant 0 : i32
    return %arg0, %c0_i32 : i32, i32
  }
}

</mosaic_0001>

<bundles_post_ra>
// kernel: actor_critic_forward.1
= control target key start
LH: loop header
LB: loop body
LE: loop exit
PB: predicated region body
PF: predicated region fallthrough
CT: control target
= control target key end

     0   :  { %12 = vsyncpa [#allocation3], 0  ;;  %s506_s24 = smov [#allocation2]   ;;  %s653_s0 = inlined_call_operand.vmem [shape: f32[8,32], index: 0, kind: input, shape index: {}]   ;;  %s654_s1 = inlined_call_operand.hbm [shape: bf16[32,128], index: 1, kind: input, shape index: {}]   ;;  %s655_s2 = inlined_call_operand.vmem [shape: f32[1,128], index: 2, kind: input, shape index: {}]   ;;  %s656_s3 = inlined_call_operand.vmem [shape: bf16[128,128], index: 3, kind: input, shape index: {}]   ;;  %s657_s4 = inlined_call_operand.vmem [shape: f32[1,128], index: 4, kind: input, shape index: {}]   ;;  %s658_s5 = inlined_call_operand.vmem [shape: bf16[128,8], index: 5, kind: input, shape index: {}]   ;;  %s659_s6 = inlined_call_operand.vmem [shape: f32[1,8], index: 6, kind: input, shape index: {}]   ;;  %s660_s7 = inlined_call_operand.vmem [shape: f32[8,8], index: 7, kind: output, shape index: {}]  }
   0x1   :  { %s20_s25 = sshll.u32 %s506_s24, 4  ;;  %s482_s28 = scalar_lea.hbm %s654_s1, 256  ;;  %s21_s25 = int_to_ptr.vmem [resolvable:$true] %s20_s25 }
   0x2   :  { %p483_p0 = scmp.ne.s32.totalorder %s654_s1, %s482_s28  ;;  %p486_p1 = scmp.lt.u32.totalorder %s482_s28, %s654_s1 }
   0x4   :  { %p488_p2 = pnand %p486_p1, %p483_p0 }
   0x6   :  { %491 = shalt.err (!%p488_p2)
}
   0x7   :  { %s492_s10 = scalar_lea.vmem %s21_s25, 256  ;;  %p497_p4 = scmp.lt.s32.totalorder %s21_s25, %s21_s25 }
   0x8   :  { %p493_p3 = scmp.ne.s32.totalorder %s21_s25, %s492_s10  ;;  %p498_p5 = scmp.lt.s32.totalorder %s492_s10, %s492_s10 }
   0xa   :  { %p499_p6 = por %p498_p5, %p497_p4 }
   0xc   :  { %p500_p7 = pnand %p499_p6, %p493_p3 }
   0xe   :  { %503 = shalt.err (!%p500_p7)
}
   0xf   :  { %s507_s11 = smov 64   ;;  %s508_s12 = smov 4  }
  0x10   :  { %26 = dma.hbm_to_vmem [thread:$0]  %s654_s1, 256, %s21_s25, [#allocation3], %s507_s11, %s507_s11, %s508_s12  }
  0x11   :  { %504 = dma.done.wait [#allocation3], 256  }
  0x12   :  { %505 = vsyncadd [#allocation3], 4294967040  ;;  %v509_v0 = vmov 0.0   ;;  %vm510_vm0 = vmmov 0   ;;  %v456_v1 = vld [vmem:[#allocation2] sm:$0xff]   ;;  %v457_v2 = vld [vmem:[#allocation2 + $0x8] sm:$0xff]   ;;  %v336_v37 = vlaneseq }
  0x13   :  { %403 = vmatprep.subr.bf16.mxu0 %v509_v0  ;;  %407 = vmatprep.mubr.msk.bf16.mxu0 %vm510_vm0, %v509_v0  ;;  %v41_v3 = vld [vmem:[%s653_s0] sm:$0xff]  ;;  %v459_v6 = vld [vmem:[%s656_s3 + $0x8] sm:$0xff]   ;;  %vm66_vm1 = vcmask 261120   ;;  %v460_v7 = vld [vmem:[%s656_s3 + $0x10] sm:$0xff]   ;;  %vm341_vm3 = vcmask 64512  }
  0x14   :  { %411 = vmatprep.subr.bf16.mxu1 %v509_v0  ;;  %427 = vmatprep.mubr.msk.bf16.mxu1 %vm510_vm0, %v509_v0  ;;  %v458_v4 = vld [vmem:[%s656_s3] sm:$0xff]   ;;  %v42_v5 = vpack.c.bf16 %v41_v3, %v41_v3  ;;  %v461_v8 = vld [vmem:[%s656_s3 + $0x18] sm:$0xff]   ;;  %v463_v10 = vld [vmem:[%s656_s3 + $0x28] sm:$0xff]   ;;  %v337_v38 = vand.u32 127, %v336_v37 }
  0x15   :  { %404 = vmatpush3.bf16.msra.mxu0 %v456_v1  ;;  %412 = vmatpush3.bf16.msra.mxu1 %v458_v4  ;;  %v462_v9 = vld [vmem:[%s656_s3 + $0x20] sm:$0xff]   ;;  %v464_v11 = vld [vmem:[%s656_s3 + $0x30] sm:$0xff]   ;;  %v465_v12 = vld [vmem:[%s656_s3 + $0x38] sm:$0xff]  }
  0x16   :  { %405 = vmatprep.subr.bf16.mxu0 %v509_v0  ;;  %413 = vmatprep.subr.bf16.mxu1 %v509_v0  ;;  %v466_v13 = vld [vmem:[%s658_s5] sm:$0xff]   ;;  %v467_v14 = vld [vmem:[%s658_s5 + $0x8] sm:$0xff]   ;;  %v468_v15 = vld [vmem:[%s658_s5 + $0x10] sm:$0xff]   ;;  %vm338_vm2 = vcmp.lt.s32.totalorder %v337_v38, 5  ;;  %vm339_vm4 = vcmp.eq.s32.totalorder %v337_v38, 5 }
  0x17   :  { %v469_v16 = vld [vmem:[%s658_s5 + $0x18] sm:$0xff]   ;;  %v360_v17 = vld [vmem:[%s655_s2] ss:$0 sm:$0xff]  ;;  %v471_v26 = vld [vmem:[%s658_s5 + $0x28] sm:$0xff]  }
  0x18   :  { %v470_v25 = vld [vmem:[%s658_s5 + $0x20] sm:$0xff]   ;;  %v472_v27 = vld [vmem:[%s658_s5 + $0x30] sm:$0xff]   ;;  %v473_v28 = vld [vmem:[%s658_s5 + $0x38] sm:$0xff]  }
  0x19   :  { %406 = vmatpush3.bf16.msra.mxu0 %v457_v2  ;;  %414 = vmatpush3.bf16.msra.mxu1 %v459_v6  ;;  %v364_v29 = vld [vmem:[%s657_s4] ss:$0 sm:$0xff] }
  0x1a   :  { %431 = vmatprep.subr.bf16.mxu0 %v509_v0  ;;  %415 = vmatprep.subr.bf16.mxu1 %v509_v0  ;;  %v373_v39 = vld [vmem:[%s659_s6] ss:$0 sm:$0xff] }
  0x1c   :  { %408 = vmatmul.mubr.msk.bf16.vlgmr.msra.gmra.mrb[0].mxu0 %vm66_vm1, %v42_v5 }
  0x1d   :  { %447 = vmatprep.mubr.msk.bf16.mxu0 %vm510_vm0, %v509_v0  ;;  %416 = vmatpush3.bf16.msra.mxu1 %v460_v7 }
  0x1e   :  { %417 = vmatprep.subr.bf16.mxu1 %v509_v0  ;;  %432 = vmatpush3.bf16.msra.mxu0 %v466_v13 }
  0x1f   :  { %433 = vmatprep.subr.bf16.mxu0 %v509_v0 }
  0x21   :  { %418 = vmatpush3.bf16.msra.mxu1 %v461_v8 }
  0x22   :  { %419 = vmatprep.subr.bf16.mxu1 %v509_v0  ;;  %434 = vmatpush3.bf16.msra.mxu0 %v467_v14 }
  0x23   :  { %435 = vmatprep.subr.bf16.mxu0 %v509_v0 }
  0x25   :  { %420 = vmatpush3.bf16.msra.mxu1 %v462_v9 }
  0x26   :  { %421 = vmatprep.subr.bf16.mxu1 %v509_v0  ;;  %436 = vmatpush3.bf16.msra.mxu0 %v468_v15 }
  0x27   :  { %437 = vmatprep.subr.bf16.mxu0 %v509_v0 }
  0x29   :  { %422 = vmatpush3.bf16.msra.mxu1 %v463_v10 }
  0x2a   :  { %423 = vmatprep.subr.bf16.mxu1 %v509_v0  ;;  %438 = vmatpush3.bf16.msra.mxu0 %v469_v16 }
  0x2b   :  { %439 = vmatprep.subr.bf16.mxu0 %v509_v0 }
  0x2d   :  { %424 = vmatpush3.bf16.msra.mxu1 %v464_v11 }
  0x2e   :  { %425 = vmatprep.subr.bf16.mxu1 %v509_v0  ;;  %440 = vmatpush3.bf16.msra.mxu0 %v470_v25 }
  0x2f   :  { %441 = vmatprep.subr.bf16.mxu0 %v509_v0 }
  0x31   :  { %426 = vmatpush3.bf16.msra.mxu1 %v465_v12 }
  0x32   :  { %442 = vmatpush3.bf16.msra.mxu0 %v471_v26 }
  0x33   :  { %443 = vmatprep.subr.bf16.mxu0 %v509_v0 }
  0x36   :  { %444 = vmatpush3.bf16.msra.mxu0 %v472_v27 }
  0x37   :  { %445 = vmatprep.subr.bf16.mxu0 %v509_v0 }
  0x3a   :  { %446 = vmatpush3.bf16.msra.mxu0 %v473_v28 }
  0xef   :  { %v104_v18 = vpop.f32.mrb[0].mxu0 }
  0xf0   :  { %v105_v19 = vadd.f32 %v360_v17, %v104_v18  ;;  %v409_v20 = vpop.f32.mrb[1].mxu0 }
  0xf1   :  { %v107_v21 = vpop.f32.mrb[2].mxu0 }
  0xf2   :  { %474 = vtanh.f32 %v105_v19  ;;  %v410_v22 = vpop.f32.mrb[3].mxu0 }
  0xfc   :  { %v475_v23 = vpop.eup %474 }
  0xfd   :  { %v111_v24 = vpack.c.bf16 %v475_v23, %v475_v23 }
  0xff   :  { %428 = vmatmul.mubr.bf16.vlgmr.msra.gmra.mrb[0].mxu1 %v111_v24 }
 0x1d2   :  { %v217_v30 = vpop.f32.mrb[0].mxu1 }
 0x1d3   :  { %v218_v31 = vadd.f32 %v364_v29, %v217_v30  ;;  %v429_v32 = vpop.f32.mrb[1].mxu1 }
 0x1d4   :  { %v220_v33 = vpop.f32.mrb[2].mxu1 }
 0x1d5   :  { %476 = vtanh.f32 %v218_v31  ;;  %v430_v34 = vpop.f32.mrb[3].mxu1 }
 0x1df   :  { %v477_v35 = vpop.eup %476 }
 0x1e0   :  { %v224_v36 = vpack.c.bf16 %v477_v35, %v477_v35 }
 0x1e2   :  { %448 = vmatmul.mubr.bf16.vlgmr.msra.gmra.mrb[4].mxu0 %v224_v36 }
 0x2b5   :  { %v330_v40 = vpop.f32.mrb[4].mxu0 }
 0x2b6   :  { %v331_v41 = vadd.f32 %v373_v39, %v330_v40  ;;  %v449_v42 = vpop.f32.mrb[5].mxu0 }
 0x2b7   :  { %v333_v43 = vpop.f32.mrb[6].mxu0 }
 0x2b8   :  { %v450_v44 = vpop.f32.mrb[7].mxu0  ;;  %v340_v45 = vsel %vm338_vm2, %v331_v41, -inf }
 0x2b9   :  { %v342_v46 = vsel %vm341_vm3, %v340_v45, -inf }
 0x2ba   :  { %343 = vmax.xlane.f32.xlu0 %v342_v46 }
 0x347   :  { %v344_v47 = vpop.xlane.xlu0 %343 }
 0x348   :  { %v345_v48 = vsub.f32 %v340_v45, %v344_v47 }
 0x34a   :  { %v346_v49 = vmul.f32 1.442695, %v345_v48 }
 0x34c   :  { %478 = vpow2.f32 %v346_v49 }
 0x356   :  { %v479_v50 = vpop.eup %478 }
 0x357   :  { %v348_v51 = vsel %vm341_vm3, %v479_v50, 0.0 }
 0x358   :  { %349 = vadd.xlane.f32.xlu0 %v348_v51 }
 0x3e5   :  { %v350_v52 = vpop.xlane.xlu0 %349 }
 0x3e6   :  { %480 = vrcp.f32 %v350_v52 }
 0x3f0   :  { %v481_v53 = vpop.eup %480 }
 0x3f1   :  { %v352_v54 = vmul.f32 %v481_v53, %v479_v50 }
 0x3f3   :  { %v353_v55 = vsel %vm339_vm4, %v331_v41, %v352_v54 }
 0x3f4   :  { %354 = vst.msk [vmem:[%s660_s7] sm:$0xff] %vm341_vm3, %v353_v55 }
 0x3f5   :  { %359 = vsyncpa [#allocation3], 1 }

</bundles_post_ra>
